<compile_context>
chip_gen: v7x
topology: tpu7x:2x2x1
jax: 0.10.0
libtpu: 0.0.40
codegen_flags: <defaults>
</compile_context>

<pallas_src>
import functools

import jax
import jax.numpy as jnp
from jax.experimental import pallas as pl
from jax.experimental.pallas import tpu as pltpu


IN_FEATURES = 7
K_PAD = 8                      # fc1 contraction padded 7 -> 8 for a clean MXU pass
H1, H2, H3, H4 = 256, 128, 64, 32
OUT_FEATURES = 1
_LANE = 128


def _round_up(n, m):
    return ((n + m - 1) // m) * m


def mlp_kernel(x_ref,
               w1_ref, b1_ref,
               w2_ref, b2_ref,
               w3_ref, b3_ref,
               w4_ref, b4_ref,
               wo_ref, bo_ref,
               o_ref):
    """One batch tile, whole forward fused in VMEM (batch on lanes).

    x_ref : (TB, 8)   f32 input tile (7 real features + 1 zero pad), batch on sublanes
    wN_ref: (out, in) bf16 weights (PyTorch [out,in] layout; w1 zero-padded to in=8), resident
    bN_ref: (out, 1)  f32 biases, broadcast along lanes
    o_ref : (1, TB)   lane-dense f32 output tile
    """
    # Transpose the small tile so batch sits on lanes / MXU result columns for every layer.
    # f32 transpose of a <=128 KB block (XLU), then cast to bf16 for the MXU.
    xt = x_ref[...].T.astype(jnp.bfloat16)                      # (8, TB)

    # ---- fc1 + relu (dropout1 -> identity in eval); K=8 -> single cheap MXU pass.
    h = jnp.dot(w1_ref[...], xt, preferred_element_type=jnp.float32)
    h = jnp.maximum(h + b1_ref[...], 0.0)                       # (256, TB) f32

    # ---- fc2 + relu (dropout2 -> identity in eval)
    h = jnp.maximum(
        jnp.dot(w2_ref[...], h.astype(jnp.bfloat16),
                preferred_element_type=jnp.float32) + b2_ref[...], 0.0)    # (128, TB)

    # ---- fc3 + relu (dropout3 -> identity in eval)
    h = jnp.maximum(
        jnp.dot(w3_ref[...], h.astype(jnp.bfloat16),
                preferred_element_type=jnp.float32) + b3_ref[...], 0.0)    # (64, TB)

    # ---- fc4 + relu
    h = jnp.maximum(
        jnp.dot(w4_ref[...], h.astype(jnp.bfloat16),
                preferred_element_type=jnp.float32) + b4_ref[...], 0.0)    # (32, TB)

    # ---- out (linear, no activation): (1, TB) lane-dense store.
    y = jnp.dot(wo_ref[...], h.astype(jnp.bfloat16),
                preferred_element_type=jnp.float32) + bo_ref[...]
    o_ref[...] = y.astype(o_ref.dtype)


@functools.partial(jax.jit, static_argnames=("tb",))
def noise_prediction_forward(x, params, tb=4096):
    """x: (B, 7) float, params dict (f32 weights [out,in], biases [out,1]). Returns (B, 1) f32."""
    B = x.shape[0]

    # --- batch tiling: lane-aligned; cap the tile so grid >= 2 whenever Bp allows it,
    #     so both v7x TensorCores get work via the 'parallel' grid axis.
    Bp = _round_up(B, _LANE)
    tb_req = max(_LANE, _round_up(tb, _LANE))
    if Bp >= 2 * _LANE:
        tb_eff = min(tb_req, _round_up(Bp // 2, _LANE))
    else:
        tb_eff = _LANE
    Bp = _round_up(Bp, tb_eff)
    grid = Bp // tb_eff

    # Pad batch up to the tile multiple and the feature dim 7 -> 8 (zero column) in one cheap
    # pad; NO wrapper-side transpose (the kernel transposes each tile in VMEM).
    xp = jnp.pad(x.astype(jnp.float32),
                 ((0, Bp - B), (0, K_PAD - IN_FEATURES)))        # (Bp, 8) f32

    # bf16 weights for the MXU (f32 accumulation in-kernel); biases stay f32.
    w1 = jnp.pad(params["w1"], ((0, 0), (0, K_PAD - IN_FEATURES))).astype(jnp.bfloat16)
    w2 = params["w2"].astype(jnp.bfloat16)
    w3 = params["w3"].astype(jnp.bfloat16)
    w4 = params["w4"].astype(jnp.bfloat16)
    wo = params["wo"].astype(jnp.bfloat16)
    b1, b2, b3, b4, bo = (params["b1"], params["b2"], params["b3"],
                          params["b4"], params["bo"])

    def resident(shape):
        # Full-array block with a constant block index: stays resident in VMEM, no re-fetch.
        return pl.BlockSpec(shape, lambda i: (0, 0))

    grid_spec = pltpu.PrefetchScalarGridSpec(
        num_scalar_prefetch=0,
        grid=(grid,),
        in_specs=[
            pl.BlockSpec((tb_eff, K_PAD), lambda i: (i, 0)),     # x tile (batch on sublanes)
            resident(w1.shape), resident(b1.shape),
            resident(w2.shape), resident(b2.shape),
            resident(w3.shape), resident(b3.shape),
            resident(w4.shape), resident(b4.shape),
            resident(wo.shape), resident(bo.shape),
        ],
        out_specs=pl.BlockSpec((OUT_FEATURES, tb_eff), lambda i: (0, i)),
    )

    # Advisory cost hint for XLA's scheduler around the custom call.
    mac = K_PAD * H1 + H1 * H2 + H2 * H3 + H3 * H4 + H4 * OUT_FEATURES
    flops = 2 * Bp * mac
    param_bytes = 2 * mac + 4 * (H1 + H2 + H3 + H4 + OUT_FEATURES)
    bytes_accessed = Bp * K_PAD * 4 + Bp * OUT_FEATURES * 4 + param_bytes

    out_t = pl.pallas_call(
        mlp_kernel,
        out_shape=jax.ShapeDtypeStruct((OUT_FEATURES, Bp), jnp.float32),
        grid_spec=grid_spec,
        compiler_params=pltpu.CompilerParams(
            dimension_semantics=("parallel",),          # batch tiles shard across TCs (v7x)
            vmem_limit_bytes=48 * 1024 * 1024,          # explicit: defaults never cap the tile
        ),
        cost_estimate=pl.CostEstimate(flops=flops, transcendentals=0,
                                      bytes_accessed=bytes_accessed),
    )(xp, w1, b1, w2, b2, w3, b3, w4, b4, wo, bo)

    return out_t[:, :B].T                                        # (B, 1)


def init_params(key):
    """Deterministic synthetic parameters. Weights [out, in] (PyTorch layout), biases [out, 1]."""
    dims = [(H1, IN_FEATURES), (H2, H1), (H3, H2), (H4, H3), (OUT_FEATURES, H4)]
    names = ["1", "2", "3", "4", "o"]
    params = {}
    for (fan_out, fan_in), name in zip(dims, names):
        key, kw, kb = jax.random.split(key, 3)
        bound = 1.0 / jnp.sqrt(fan_in)   # matches PyTorch Linear default init range
        params[f"w{name}"] = jax.random.uniform(
            kw, (fan_out, fan_in), jnp.float32, -bound, bound)
        params[f"b{name}"] = jax.random.uniform(
            kb, (fan_out, 1), jnp.float32, -bound, bound)
    return params


def reference_forward(x, params):
    """True f32 semantics of the PyTorch module (eval mode)."""
    prec = jax.lax.Precision.HIGHEST
    h = jnp.maximum(jnp.dot(x, params["w1"].T, precision=prec) + params["b1"].T, 0.0)
    h = jnp.maximum(jnp.dot(h, params["w2"].T, precision=prec) + params["b2"].T, 0.0)
    h = jnp.maximum(jnp.dot(h, params["w3"].T, precision=prec) + params["b3"].T, 0.0)
    h = jnp.maximum(jnp.dot(h, params["w4"].T, precision=prec) + params["b4"].T, 0.0)
    return jnp.dot(h, params["wo"].T, precision=prec) + params["bo"].T


def bf16_sim_forward(x, params):
    """f32-math emulation of the kernel's bf16-inputs / f32-accumulate numerics."""
    prec = jax.lax.Precision.HIGHEST
    q = lambda a: a.astype(jnp.bfloat16).astype(jnp.float32)
    h = q(x)
    for n in ("1", "2", "3", "4"):
        h = jnp.maximum(jnp.dot(h, q(params[f"w{n}"]).T, precision=prec)
                        + params[f"b{n}"].T, 0.0)
        h = q(h)
    return jnp.dot(h, q(params["wo"]).T, precision=prec) + params["bo"].T


if __name__ == "__main__":
    key = jax.random.PRNGKey(0)
    key, kx = jax.random.split(key)
    params = init_params(key)

    def check(x, tb):
        y = jax.block_until_ready(noise_prediction_forward(x, params, tb=tb))
        assert y.shape == (x.shape[0], OUT_FEATURES)
        y_sim = bf16_sim_forward(x, params)     # same bf16 quantization, f32 math
        y_f32 = reference_forward(x, params)    # true f32 module semantics
        assert jnp.allclose(y, y_sim, atol=1e-2, rtol=1e-2), "mismatch vs bf16-sim reference"
        assert jnp.allclose(y, y_f32, atol=5e-2, rtol=5e-2), "mismatch vs f32 reference"

    # Lane-aligned batch: grid=2 (exercises the megacore 'parallel' split).
    check(jax.random.normal(kx, (256, IN_FEATURES), dtype=jnp.float32), tb=4096)
    # Ragged small batch: padded up to a single 128-lane tile (grid=1 path).
    check(jax.random.normal(jax.random.PRNGKey(1), (50, IN_FEATURES), dtype=jnp.float32), tb=4096)
    # Ragged multi-tile batch with a small tile (grid=3 path).
    check(jax.random.normal(jax.random.PRNGKey(2), (300, IN_FEATURES), dtype=jnp.float32), tb=128)

    print("KERNEL_OK")
</pallas_src>

<mosaic_0001>
module attributes {stable_mosaic.version = 11 : i64} {
  func.func @mlp_kernel(%arg0: i32, %arg1: memref<128x8xf32, #tpu.memory_space<vmem>>, %arg2: memref<256x8xbf16, #tpu.memory_space<vmem>>, %arg3: memref<256x1xf32, #tpu.memory_space<vmem>>, %arg4: memref<128x256xbf16, #tpu.memory_space<vmem>>, %arg5: memref<128x1xf32, #tpu.memory_space<vmem>>, %arg6: memref<64x128xbf16, #tpu.memory_space<vmem>>, %arg7: memref<64x1xf32, #tpu.memory_space<vmem>>, %arg8: memref<32x64xbf16, #tpu.memory_space<vmem>>, %arg9: memref<32x1xf32, #tpu.memory_space<vmem>>, %arg10: memref<1x32xbf16, #tpu.memory_space<vmem>>, %arg11: memref<1x1xf32, #tpu.memory_space<vmem>>, %arg12: memref<1x128xf32, #tpu.memory_space<vmem>>) attributes {dimension_semantics = [#tpu.dimension_semantics<parallel>], iteration_bounds = array<i64: 2>, scalar_prefetch = 0 : i64, scratch_operands = 0 : i64, tpu.core_type = #tpu.core_type<tc>, window_params = [{transform_indices = @transform_0, window_bounds = array<i64: 128, 8>}, {pipeline_mode = #tpu.pipeline_mode<synchronous>, transform_indices = @transform_1, window_bounds = array<i64: 256, 8>}, {pipeline_mode = #tpu.pipeline_mode<synchronous>, transform_indices = @transform_2, window_bounds = array<i64: 256, 1>}, {pipeline_mode = #tpu.pipeline_mode<synchronous>, transform_indices = @transform_3, window_bounds = array<i64: 128, 256>}, {pipeline_mode = #tpu.pipeline_mode<synchronous>, transform_indices = @transform_4, window_bounds = array<i64: 128, 1>}, {pipeline_mode = #tpu.pipeline_mode<synchronous>, transform_indices = @transform_5, window_bounds = array<i64: 64, 128>}, {pipeline_mode = #tpu.pipeline_mode<synchronous>, transform_indices = @transform_6, window_bounds = array<i64: 64, 1>}, {pipeline_mode = #tpu.pipeline_mode<synchronous>, transform_indices = @transform_7, window_bounds = array<i64: 32, 64>}, {pipeline_mode = #tpu.pipeline_mode<synchronous>, transform_indices = @transform_8, window_bounds = array<i64: 32, 1>}, {pipeline_mode = #tpu.pipeline_mode<synchronous>, transform_indices = @transform_9, window_bounds = array<i64: 1, 32>}, {pipeline_mode = #tpu.pipeline_mode<synchronous>, transform_indices = @transform_10, window_bounds = array<i64: 1, 1>}, {transform_indices = @transform_11, window_bounds = array<i64: 1, 128>}]} {
    %c0 = arith.constant 0 : index
    %c0_0 = arith.constant 0 : index
    %0 = vector.load %arg1[%c0, %c0_0] : memref<128x8xf32, #tpu.memory_space<vmem>>, vector<128x8xf32>
    %1 = tpu.transpose %0, [1, 0] : vector<128x8xf32> -> vector<8x128xf32>
    %2 = arith.truncf %1 : vector<8x128xf32> to vector<8x128xbf16>
    %c0_1 = arith.constant 0 : index
    %c0_2 = arith.constant 0 : index
    %3 = vector.load %arg2[%c0_1, %c0_2] : memref<256x8xbf16, #tpu.memory_space<vmem>>, vector<256x8xbf16>
    %cst = arith.constant dense<0.000000e+00> : vector<256x128xf32>
    %4 = tpu.matmul %3, %2, %cst {dimension_numbers = #tpu.dot_dimension_numbers<[1], [0], [0], [1], [0, 0, 1, 1], [], []>} : vector<256x8xbf16>, vector<8x128xbf16>, vector<256x128xf32> -> vector<256x128xf32>
    %c0_3 = arith.constant 0 : index
    %c0_4 = arith.constant 0 : index
    %5 = vector.load %arg3[%c0_3, %c0_4] : memref<256x1xf32, #tpu.memory_space<vmem>>, vector<256x1xf32>
    %6 = vector.broadcast %5 : vector<256x1xf32> to vector<256x128xf32>
    %7 = arith.addf %4, %6 : vector<256x128xf32>
    %cst_5 = arith.constant 0.000000e+00 : f32
    %8 = vector.broadcast %cst_5 : f32 to vector<256x128xf32>
    %9 = arith.maximumf %7, %8 : vector<256x128xf32>
    %c0_6 = arith.constant 0 : index
    %c0_7 = arith.constant 0 : index
    %10 = vector.load %arg4[%c0_6, %c0_7] : memref<128x256xbf16, #tpu.memory_space<vmem>>, vector<128x256xbf16>
    %11 = arith.truncf %9 : vector<256x128xf32> to vector<256x128xbf16>
    %cst_8 = arith.constant dense<0.000000e+00> : vector<128x128xf32>
    %12 = tpu.matmul %10, %11, %cst_8 {dimension_numbers = #tpu.dot_dimension_numbers<[1], [0], [0], [1], [0, 0, 1, 1], [], []>} : vector<128x256xbf16>, vector<256x128xbf16>, vector<128x128xf32> -> vector<128x128xf32>
    %c0_9 = arith.constant 0 : index
    %c0_10 = arith.constant 0 : index
    %13 = vector.load %arg5[%c0_9, %c0_10] : memref<128x1xf32, #tpu.memory_space<vmem>>, vector<128x1xf32>
    %14 = vector.broadcast %13 : vector<128x1xf32> to vector<128x128xf32>
    %15 = arith.addf %12, %14 : vector<128x128xf32>
    %cst_11 = arith.constant 0.000000e+00 : f32
    %16 = vector.broadcast %cst_11 : f32 to vector<128x128xf32>
    %17 = arith.maximumf %15, %16 : vector<128x128xf32>
    %c0_12 = arith.constant 0 : index
    %c0_13 = arith.constant 0 : index
    %18 = vector.load %arg6[%c0_12, %c0_13] : memref<64x128xbf16, #tpu.memory_space<vmem>>, vector<64x128xbf16>
    %19 = arith.truncf %17 : vector<128x128xf32> to vector<128x128xbf16>
    %cst_14 = arith.constant dense<0.000000e+00> : vector<64x128xf32>
    %20 = tpu.matmul %18, %19, %cst_14 {dimension_numbers = #tpu.dot_dimension_numbers<[1], [0], [0], [1], [0, 0, 1, 1], [], []>} : vector<64x128xbf16>, vector<128x128xbf16>, vector<64x128xf32> -> vector<64x128xf32>
    %c0_15 = arith.constant 0 : index
    %c0_16 = arith.constant 0 : index
    %21 = vector.load %arg7[%c0_15, %c0_16] : memref<64x1xf32, #tpu.memory_space<vmem>>, vector<64x1xf32>
    %22 = vector.broadcast %21 : vector<64x1xf32> to vector<64x128xf32>
    %23 = arith.addf %20, %22 : vector<64x128xf32>
    %cst_17 = arith.constant 0.000000e+00 : f32
    %24 = vector.broadcast %cst_17 : f32 to vector<64x128xf32>
    %25 = arith.maximumf %23, %24 : vector<64x128xf32>
    %c0_18 = arith.constant 0 : index
    %c0_19 = arith.constant 0 : index
    %26 = vector.load %arg8[%c0_18, %c0_19] : memref<32x64xbf16, #tpu.memory_space<vmem>>, vector<32x64xbf16>
    %27 = arith.truncf %25 : vector<64x128xf32> to vector<64x128xbf16>
    %cst_20 = arith.constant dense<0.000000e+00> : vector<32x128xf32>
    %28 = tpu.matmul %26, %27, %cst_20 {dimension_numbers = #tpu.dot_dimension_numbers<[1], [0], [0], [1], [0, 0, 1, 1], [], []>} : vector<32x64xbf16>, vector<64x128xbf16>, vector<32x128xf32> -> vector<32x128xf32>
    %c0_21 = arith.constant 0 : index
    %c0_22 = arith.constant 0 : index
    %29 = vector.load %arg9[%c0_21, %c0_22] : memref<32x1xf32, #tpu.memory_space<vmem>>, vector<32x1xf32>
    %30 = vector.broadcast %29 : vector<32x1xf32> to vector<32x128xf32>
    %31 = arith.addf %28, %30 : vector<32x128xf32>
    %cst_23 = arith.constant 0.000000e+00 : f32
    %32 = vector.broadcast %cst_23 : f32 to vector<32x128xf32>
    %33 = arith.maximumf %31, %32 : vector<32x128xf32>
    %c0_24 = arith.constant 0 : index
    %c0_25 = arith.constant 0 : index
    %34 = vector.load %arg10[%c0_24, %c0_25] : memref<1x32xbf16, #tpu.memory_space<vmem>>, vector<1x32xbf16>
    %35 = arith.truncf %33 : vector<32x128xf32> to vector<32x128xbf16>
    %cst_26 = arith.constant dense<0.000000e+00> : vector<1x128xf32>
    %36 = tpu.matmul %34, %35, %cst_26 {dimension_numbers = #tpu.dot_dimension_numbers<[1], [0], [0], [1], [0, 0, 1, 1], [], []>} : vector<1x32xbf16>, vector<32x128xbf16>, vector<1x128xf32> -> vector<1x128xf32>
    %c0_27 = arith.constant 0 : index
    %c0_28 = arith.constant 0 : index
    %37 = vector.load %arg11[%c0_27, %c0_28] : memref<1x1xf32, #tpu.memory_space<vmem>>, vector<1x1xf32>
    %38 = vector.broadcast %37 : vector<1x1xf32> to vector<1x128xf32>
    %39 = arith.addf %36, %38 : vector<1x128xf32>
    %c0_29 = arith.constant 0 : index
    %c0_30 = arith.constant 0 : index
    %40 = vector.load %arg12[%c0_29, %c0_30] : memref<1x128xf32, #tpu.memory_space<vmem>>, vector<1x128xf32>
    tpu.vector_store %arg12[%c0_29, %c0_30], %39 {strides = array<i32>} : memref<1x128xf32, #tpu.memory_space<vmem>>, vector<1x128xf32>,
    return
  }
  func.func @transform_0(%arg0: i32) -> (i32, i32) {
    %c0_i32 = arith.constant 0 : i32
    %c0_i32_0 = arith.constant 0 : i32
    return %arg0, %c0_i32 : i32, i32
  }
  func.func @transform_1(%arg0: i32) -> (i32, i32) {
    %c0_i32 = arith.constant 0 : i32
    %c0_i32_0 = arith.constant 0 : i32
    %c0_i32_1 = arith.constant 0 : i32
    return %c0_i32, %c0_i32_0 : i32, i32
  }
  func.func @transform_2(%arg0: i32) -> (i32, i32) {
    %c0_i32 = arith.constant 0 : i32
    %c0_i32_0 = arith.constant 0 : i32
    %c0_i32_1 = arith.constant 0 : i32
    return %c0_i32, %c0_i32_0 : i32, i32
  }
  func.func @transform_3(%arg0: i32) -> (i32, i32) {
    %c0_i32 = arith.constant 0 : i32
    %c0_i32_0 = arith.constant 0 : i32
    %c0_i32_1 = arith.constant 0 : i32
    return %c0_i32, %c0_i32_0 : i32, i32
  }
  func.func @transform_4(%arg0: i32) -> (i32, i32) {
    %c0_i32 = arith.constant 0 : i32
    %c0_i32_0 = arith.constant 0 : i32
    %c0_i32_1 = arith.constant 0 : i32
    return %c0_i32, %c0_i32_0 : i32, i32
  }
  func.func @transform_5(%arg0: i32) -> (i32, i32) {
    %c0_i32 = arith.constant 0 : i32
    %c0_i32_0 = arith.constant 0 : i32
    %c0_i32_1 = arith.constant 0 : i32
    return %c0_i32, %c0_i32_0 : i32, i32
  }
  func.func @transform_6(%arg0: i32) -> (i32, i32) {
    %c0_i32 = arith.constant 0 : i32
    %c0_i32_0 = arith.constant 0 : i32
    %c0_i32_1 = arith.constant 0 : i32
    return %c0_i32, %c0_i32_0 : i32, i32
  }
  func.func @transform_7(%arg0: i32) -> (i32, i32) {
    %c0_i32 = arith.constant 0 : i32
    %c0_i32_0 = arith.constant 0 : i32
    %c0_i32_1 = arith.constant 0 : i32
    return %c0_i32, %c0_i32_0 : i32, i32
  }
  func.func @transform_8(%arg0: i32) -> (i32, i32) {
    %c0_i32 = arith.constant 0 : i32
    %c0_i32_0 = arith.constant 0 : i32
    %c0_i32_1 = arith.constant 0 : i32
    return %c0_i32, %c0_i32_0 : i32, i32
  }
  func.func @transform_9(%arg0: i32) -> (i32, i32) {
    %c0_i32 = arith.constant 0 : i32
    %c0_i32_0 = arith.constant 0 : i32
    %c0_i32_1 = arith.constant 0 : i32
    return %c0_i32, %c0_i32_0 : i32, i32
  }
  func.func @transform_10(%arg0: i32) -> (i32, i32) {
    %c0_i32 = arith.constant 0 : i32
    %c0_i32_0 = arith.constant 0 : i32
    %c0_i32_1 = arith.constant 0 : i32
    return %c0_i32, %c0_i32_0 : i32, i32
  }
  func.func @transform_11(%arg0: i32) -> (i32, i32) {
    %c0_i32 = arith.constant 0 : i32
    %c0_i32_0 = arith.constant 0 : i32
    return %c0_i32, %arg0 : i32, i32
  }
}

</mosaic_0001>

<bundles_post_ra>
// kernel: noise_prediction_forward.1
= control target key start
LH: loop header
LB: loop body
LE: loop exit
PB: predicated region body
PF: predicated region fallthrough
CT: control target
= control target key end

     0   :  { %s2672_s0 = inlined_call_operand.vmem [shape: f32[256,8], index: 0, kind: input, shape index: {}]   ;;  %s2673_s1 = inlined_call_operand.vmem [shape: bf16[256,8], index: 1, kind: input, shape index: {}]   ;;  %s2674_s2 = inlined_call_operand.vmem [shape: f32[256,1], index: 2, kind: input, shape index: {}]   ;;  %s2675_s3 = inlined_call_operand.vmem [shape: bf16[128,256], index: 3, kind: input, shape index: {}]   ;;  %s2676_s4 = inlined_call_operand.vmem [shape: f32[128,1], index: 4, kind: input, shape index: {}]   ;;  %s2677_s5 = inlined_call_operand.vmem [shape: bf16[64,128], index: 5, kind: input, shape index: {}]   ;;  %s2678_s6 = inlined_call_operand.vmem [shape: f32[64,1], index: 6, kind: input, shape index: {}]   ;;  %s2679_s7 = inlined_call_operand.vmem [shape: bf16[32,64], index: 7, kind: input, shape index: {}]   ;;  %s2680_s8 = inlined_call_operand.vmem [shape: f32[32,1], index: 8, kind: input, shape index: {}]   ;;  %s2681_s9 = inlined_call_operand.vmem [shape: bf16[1,32], index: 9, kind: input, shape index: {}]   ;;  %s2682_s10 = inlined_call_operand.<no memory space> [shape: f32[1,1], index: 10, kind: input, shape index: {}]   ;;  %s2683_s11 = inlined_call_operand.hbm [shape: f32[1,256], index: 11, kind: output, shape index: {}]  }
   0x1   :  { %v16_v0 = vstv %s2682_s10 }
   0x2   :  { %17 = vst [vmem:[#allocation2] sm:$0x1] %v16_v0 }
   0x3   :  { %18 = vsyncpa [#allocation4], 0 }
   0x4   :  { %20 = vsyncpa [#allocation4 + $0x1], 0  ;;  %s2166_s19 = smov 0   ;;  %s2168_s20 = smov 0  }
   0x5   :  { %s2170_s21 = smov 0   ;;  %s2172_s22 = smov 0  }
   0x6 LB: > { %s1697_s10 = sadd.s32 4294967295, %s2097_s22   ;;  %s1698_s23 = sadd.s32 4294967294, %s2097_s22   ;;  %s2097_s22 = sphi %s2172_s22, %s2689_s22   ;;  %s2093_s21 = sphi %s2170_s21, %s2688_s21   ;;  %s2089_s20 = sphi %s2168_s20, %s2687_s20   ;;  %s2085_s19 = sphi %s2166_s19, %s2686_s19  }
   0x7   : > { %s2189_s24 = sadd.s32 1, %s2097_s22   ;;  %s269_s25 = sadd.s32 1, %s2093_s21 }
   0x8   : > { %s266_s26 = ssub.s32 %s2097_s22, %s2189_s24  ;;  %p279_p0 = scmp.ne.s32.totalorder %s2093_s21, %s2089_s20 }
   0x9   : > { %p267_p1 = scmp.eq.s32.totalorder %s266_s26, 0  ;;  %p280_p2 = scmp.eq.s32.totalorder %s1697_s10, 1 }
   0xa   : > { %p285_p3 = scmp.ne.s32.totalorder %s2089_s20, %s2085_s19  ;;  %p286_p4 = scmp.eq.s32.totalorder %s1698_s23, 1 }
   0xb   : > { %s2199_s27 = scalar_select %p267_p1, %s2093_s21, %s269_s25  }
   0xc   : > { %p2201_p5 = por %p280_p2, %p279_p0  ;;  %p2205_p6 = por %p286_p4, %p285_p3 }
   0xd   : > { %p1701_p7 = scmp.ge.s32.totalorder %s2097_s22, 1  ;;  %p343_p8 = scmp.lt.s32.totalorder %s2097_s22, 3 }
   0xf   : > { %p344_p9 = pnand %p1701_p7, %p343_p8 }
  0x10   : > { %s2211_s30 = sshll.u32 (!%p344_p9), %s1697_s10, 4  ;;  %v486_v1 = vld [vmem:[%s2674_s2 + $0x80] sm:$0xff] (!%p344_p9)  ;;  %v2099_v2 = vmov (!%p344_p9), 0   ;;  %v487_v3 = vld [vmem:[%s2674_s2 + $0x88] sm:$0xff] (!%p344_p9)  ;;  %v488_v9 = vld [vmem:[%s2674_s2 + $0x90] sm:$0xff] (!%p344_p9)  ;;  %vm742_vm0 = vcmask (!%p344_p9), 64512  }
  0x11   : > { %347 = sbr.rel (%p344_p9) target bundleno = 1425 (0x591), region = 64  ;;  %p383_p10 = scmp.lt.s32.totalorder (!%p344_p9), %s2211_s30, 31  ;;  %1987 = vset.pattern.permute.xlu1 (!%p344_p9), %v2099_v2  ;;  %v470_v5 = vld [vmem:[%s2674_s2] sm:$0xff] (!%p344_p9)  ;;  %v471_v7 = vld [vmem:[%s2674_s2 + $0x8] sm:$0xff] (!%p344_p9)  ;;  %v489_v12 = vld [vmem:[%s2674_s2 + $0x98] sm:$0xff] (!%p344_p9)  ;;  %vm791_vm1 = vcmask (!%p344_p9), 1043456  }
  0x12   : > { %584 = vperm.xlu1 (!%p344_p9), %1987, %v486_v1   ;;  %v1989_v11 = vld [vmem:[%s2673_s1] sm:$0xff] (!%p344_p9)   ;;  %v472_v14 = vld [vmem:[%s2674_s2 + $0x10] sm:$0xff] (!%p344_p9)  ;;  %v473_v16 = vld [vmem:[%s2674_s2 + $0x18] sm:$0xff] (!%p344_p9)  ;;  %vm1512_vm2 = vcmask (!%p344_p9), 523264   ;;  %vm2101_vm3 = vmmov (!%p344_p9), 0   ;;  %vm1585_vm4 = vcmask (!%p344_p9), 261120  }
  0x13   : > { %1868 = vmatprep.mubr.msk.bf16.mxu0 (!%p344_p9), %vm742_vm0, %v1989_v11  ;;  %v490_v18 = vld [vmem:[%s2674_s2 + $0xa0] sm:$0xff] (!%p344_p9)  ;;  %v491_v20 = vld [vmem:[%s2674_s2 + $0xa8] sm:$0xff] (!%p344_p9)  ;;  %v492_v26 = vld [vmem:[%s2674_s2 + $0xb0] sm:$0xff] (!%p344_p9) }
  0x14   : > { %v474_v22 = vld [vmem:[%s2674_s2 + $0x20] sm:$0xff] (!%p344_p9)  ;;  %v475_v24 = vld [vmem:[%s2674_s2 + $0x28] sm:$0xff] (!%p344_p9)  ;;  %v493_v28 = vld [vmem:[%s2674_s2 + $0xb8] sm:$0xff] (!%p344_p9) }
  0x15   : > { %v476_v30 = vld [vmem:[%s2674_s2 + $0x30] sm:$0xff] (!%p344_p9)  ;;  %v477_v32 = vld [vmem:[%s2674_s2 + $0x38] sm:$0xff] (!%p344_p9)  ;;  %v495_v34 = vld [vmem:[%s2674_s2 + $0xc8] sm:$0xff] (!%p344_p9) }
  0x16   : > { %589 = vperm.xlu1 (!%p344_p9), %1987, %v487_v3   ;;  %v478_v36 = vld [vmem:[%s2674_s2 + $0x40] sm:$0xff] (!%p344_p9)  ;;  %v479_v37 = vld [vmem:[%s2674_s2 + $0x48] sm:$0xff] (!%p344_p9)  ;;  %v496_v38 = vld [vmem:[%s2674_s2 + $0xd0] sm:$0xff] (!%p344_p9) }
  0x17   : > { %v497_v39 = vld [vmem:[%s2674_s2 + $0xd8] sm:$0xff] (!%p344_p9)  ;;  %v480_v40 = vld [vmem:[%s2674_s2 + $0x50] sm:$0xff] (!%p344_p9)  ;;  %v498_v42 = vld [vmem:[%s2674_s2 + $0xe0] sm:$0xff] (!%p344_p9) }
  0x18   : > { %s384_s14 = scalar_select %p383_p10, %s2211_s30, 31  ;;  %v481_v41 = vld [vmem:[%s2674_s2 + $0x58] sm:$0xff]  ;;  %v499_v43 = vld [vmem:[%s2674_s2 + $0xe8] sm:$0xff]  ;;  %v482_v44 = vld [vmem:[%s2674_s2 + $0x60] sm:$0xff] }
  0x19   : > { %v483_v45 = vld [vmem:[%s2674_s2 + $0x68] sm:$0xff]  ;;  %v501_v46 = vld [vmem:[%s2674_s2 + $0xf8] sm:$0xff]  ;;  %v494_v47 = vld [vmem:[%s2674_s2 + $0xc0] sm:$0xff] }
  0x1a   : > { %s1703_s17 = sshll.u32 %s384_s14, 3  ;;  %504 = vperm.xlu1 %1987, %v470_v5   ;;  %v485_v48 = vld [vmem:[%s2674_s2 + $0x78] sm:$0xff]  ;;  %v500_v49 = vld [vmem:[%s2674_s2 + $0xf0] sm:$0xff]  ;;  %v1021_v50 = vld [vmem:[%s2676_s4 + $0x8] sm:$0xff]  ;;  %s2630_s14 = scalar_lea.hbm %s2683_s11, %s2211_s30 }
  0x1b   : > { %s2225_s23 = scalar_lea.vmem %s2672_s0, %s1703_s17  ;;  %v484_v51 = vld [vmem:[%s2674_s2 + $0x70] sm:$0xff]  ;;  %v1023_v52 = vld [vmem:[%s2676_s4 + $0x18] sm:$0xff]  ;;  %v1020_v53 = vld [vmem:[%s2676_s4] sm:$0xff]  ;;  %s2102_s17 = smov [#allocation3]  }
  0x1c   : > { %v389_v4 = vld [vmem:[%s2225_s23] sm:$0xff]  ;;  %v390_v6 = vld [vmem:[%s2225_s23 + $0x8] sm:$0xff]  ;;  %v391_v8 = vld [vmem:[%s2225_s23 + $0x10] sm:$0xff]  ;;  %s2039_s18 = sshll.u32 %s2102_s17, 4  ;;  %s2040_s18 = int_to_ptr.vmem [resolvable:$false] %s2039_s18 }
  0x1d   : > { %405 = vxpose.xlu0.b32.start [1/16] (narrow) %v389_v4, 8  ;;  %v392_v10 = vld [vmem:[%s2225_s23 + $0x18] sm:$0xff]  ;;  %v393_v13 = vld [vmem:[%s2225_s23 + $0x20] sm:$0xff]  ;;  %v394_v15 = vld [vmem:[%s2225_s23 + $0x28] sm:$0xff]  ;;  %s2041_s10 = scalar_lea.vmem %s2040_s18, 32 }
  0x1e   : > { %509 = vperm.xlu1 %1987, %v471_v7   ;;  %v395_v17 = vld [vmem:[%s2225_s23 + $0x30] sm:$0xff]  ;;  %v396_v19 = vld [vmem:[%s2225_s23 + $0x38] sm:$0xff]  ;;  %v397_v21 = vld [vmem:[%s2225_s23 + $0x40] sm:$0xff] }
  0x1f   : > { %v398_v23 = vld [vmem:[%s2225_s23 + $0x48] sm:$0xff]  ;;  %v399_v25 = vld [vmem:[%s2225_s23 + $0x50] sm:$0xff]  ;;  %v400_v27 = vld [vmem:[%s2225_s23 + $0x58] sm:$0xff] }
  0x20   : > { %v401_v29 = vld [vmem:[%s2225_s23 + $0x60] sm:$0xff]  ;;  %v402_v31 = vld [vmem:[%s2225_s23 + $0x68] sm:$0xff]  ;;  %v403_v33 = vld [vmem:[%s2225_s23 + $0x70] sm:$0xff] }
  0x21   : > { %406 = vxpose.xlu0.b32.cont [2/16] (narrow) %v390_v6, 8  ;;  %v404_v35 = vld [vmem:[%s2225_s23 + $0x78] sm:$0xff]  ;;  %v1025_v54 = vld [vmem:[%s2676_s4 + $0x28] sm:$0xff]  ;;  %v1022_v55 = vld [vmem:[%s2676_s4 + $0x10] sm:$0xff]  ;;  %s380_s23 = sand.u32 1, %s2089_s20  }
  0x22   : > { %594 = vperm.xlu1 %1987, %v488_v9   ;;  %v1027_v56 = vld [vmem:[%s2676_s4 + $0x38] sm:$0xff]  ;;  %v1024_v57 = vld [vmem:[%s2676_s4 + $0x20] sm:$0xff]  ;;  %v1029_v58 = vld [vmem:[%s2676_s4 + $0x48] sm:$0xff]  ;;  %s381_s25 = scalar_lea.vmem [#allocation3], %s380_s23  ;;  %s1631_s15 = scalar_lea.sflag [#allocation4], %s380_s23 }
  0x23   : > { %v1026_v59 = vld [vmem:[%s2676_s4 + $0x30] sm:$0xff]  ;;  %v1031_v60 = vld [vmem:[%s2676_s4 + $0x58] sm:$0xff]  ;;  %v1028_v61 = vld [vmem:[%s2676_s4 + $0x40] sm:$0xff]  ;;  %s1643_s26 = sshll.u32 %s381_s25, 4  ;;  %s2632_s26 = int_to_ptr.vmem [resolvable:$true] %s1643_s26 }
  0x24   : > { %v1990_v1 = vld [vmem:[%s2673_s1 + $0x8] sm:$0xff]   ;;  %v1030_v3 = vld [vmem:[%s2676_s4 + $0x50] sm:$0xff]  ;;  %v1035_v5 = vld [vmem:[%s2676_s4 + $0x78] sm:$0xff]  ;;  %s2035_s16 = scalar_lea.vmem %s2632_s26, 16  ;;  %p2042_p0 = scmp.lt.s32.totalorder %s2632_s26, %s2040_s18 }
  0x25   : > { %407 = vxpose.xlu0.b32.cont [3/16] (narrow) %v391_v8, 8  ;;  %v1991_v4 = vld [vmem:[%s2673_s1 + $0x10] sm:$0xff]   ;;  %v1032_v6 = vld [vmem:[%s2676_s4 + $0x60] sm:$0xff]  ;;  %v1992_v7 = vld [vmem:[%s2673_s1 + $0x18] sm:$0xff]   ;;  %p2036_p11 = scmp.ne.s32.totalorder %s2632_s26, %s2035_s16  ;;  %p2043_p1 = scmp.lt.s32.totalorder %s2041_s10, %s2035_s16 }
  0x26   : > { %599 = vperm.xlu1 %1987, %v489_v12   ;;  %v1326_v8 = vld [vmem:[%s2678_s6 + $0x8] sm:$0xff]  ;;  %v1034_v9 = vld [vmem:[%s2676_s4 + $0x70] sm:$0xff]  ;;  %v1328_v11 = vld [vmem:[%s2678_s6 + $0x18] sm:$0xff] }
  0x27   : > { %v1325_v12 = vld [vmem:[%s2678_s6] sm:$0xff]  ;;  %p2037_p12 = pnand %p2036_p11, %p2201_p5  ;;  %p2044_p2 = por %p2043_p1, %p2042_p0 }
  0x29   : > { %408 = vxpose.xlu0.b32.cont [4/16] (narrow) %v392_v10, 8  ;;  %v1993_v10 = vld [vmem:[%s2673_s1 + $0x20] sm:$0xff]   ;;  %p2038_p13 = pneg %p2037_p12 }
  0x2a   : > { %514 = vperm.xlu1 %1987, %v472_v14   ;;  %v1330_v14 = vld [vmem:[%s2678_s6 + $0x28] sm:$0xff] }
  0x2b   : > { %p2045_p3 = pnand %p2044_p2, %p2038_p13 }
  0x2d   : > { %409 = vxpose.xlu0.b32.cont [5/16] (narrow) %v393_v13, 8  ;;  %v1994_v13 = vld [vmem:[%s2673_s1 + $0x28] sm:$0xff]  }
  0x2e   : > { %519 = vperm.xlu1 %1987, %v473_v16   ;;  %v1995_v16 = vld [vmem:[%s2673_s1 + $0x30] sm:$0xff]  }
  0x31   : > { %410 = vxpose.xlu0.b32.cont [6/16] (narrow) %v394_v15, 8  ;;  %v1327_v15 = vld [vmem:[%s2678_s6 + $0x10] sm:$0xff] }
  0x32   : > { %604 = vperm.xlu1 %1987, %v490_v18   ;;  %v1329_v18 = vld [vmem:[%s2678_s6 + $0x20] sm:$0xff] }
  0x35   : > { %411 = vxpose.xlu0.b32.cont [7/16] (narrow) %v395_v17, 8  ;;  %v1332_v17 = vld [vmem:[%s2678_s6 + $0x38] sm:$0xff] }
  0x36   : > { %609 = vperm.xlu1 %1987, %v491_v20   ;;  %v1479_v20 = vld [vmem:[%s2680_s8 + $0x8] sm:$0xff] }
  0x39   : > { %412 = vxpose.xlu0.b32.cont [8/16] (narrow) %v396_v19, 8  ;;  %v1996_v19 = vld [vmem:[%s2673_s1 + $0x38] sm:$0xff]  }
  0x3a   : > { %524 = vperm.xlu1 %1987, %v474_v22   ;;  %v1997_v22 = vld [vmem:[%s2673_s1 + $0x40] sm:$0xff]  }
  0x3d   : > { %413 = vxpose.xlu0.b32.cont [9/16] (narrow) %v397_v21, 8  ;;  %v1331_v21 = vld [vmem:[%s2678_s6 + $0x30] sm:$0xff] }
  0x3e   : > { %529 = vperm.xlu1 %1987, %v475_v24   ;;  %v1478_v24 = vld [vmem:[%s2680_s8] sm:$0xff] }
  0x41   : > { %414 = vxpose.xlu0.b32.cont [10/16] (narrow) %v398_v23, 8  ;;  %v1481_v23 = vld [vmem:[%s2680_s8 + $0x18] sm:$0xff] }
  0x42   : > { %614 = vperm.xlu1 %1987, %v492_v26   ;;  %v1480_v26 = vld [vmem:[%s2680_s8 + $0x10] sm:$0xff] }
  0x45   : > { %415 = vxpose.xlu0.b32.cont [11/16] (narrow) %v399_v25, 8  ;;  %v1998_v25 = vld [vmem:[%s2673_s1 + $0x48] sm:$0xff]  }
  0x46   : > { %619 = vperm.xlu1 %1987, %v493_v28   ;;  %v1575_v28 = vld [vmem:[#allocation2] sm:$0x1] }
  0x49   : > { %416 = vxpose.xlu0.b32.cont [12/16] (narrow) %v400_v27, 8  ;;  %v1999_v27 = vld [vmem:[%s2673_s1 + $0x50] sm:$0xff]  }
  0x4a   : > { %534 = vperm.xlu1 %1987, %v476_v30   ;;  %v2001_v30 = vld [vmem:[%s2673_s1 + $0x60] sm:$0xff]  }
  0x4d   : > { %417 = vxpose.xlu0.b32.cont [13/16] (narrow) %v401_v29, 8  ;;  %v2000_v29 = vld [vmem:[%s2673_s1 + $0x58] sm:$0xff]  }
  0x4e   : > { %539 = vperm.xlu1 %1987, %v477_v32   ;;  %v2003_v32 = vld [vmem:[%s2673_s1 + $0x70] sm:$0xff]  }
  0x51   : > { %418 = vxpose.xlu0.b32.cont [14/16] (narrow) %v402_v31, 8  ;;  %v2002_v31 = vld [vmem:[%s2673_s1 + $0x68] sm:$0xff]  }
  0x52   : > { %629 = vperm.xlu1 %1987, %v495_v34  }
  0x55   : > { %419 = vxpose.xlu0.b32.cont [15/16] (narrow) %v403_v33, 8  ;;  %v2004_v33 = vld [vmem:[%s2673_s1 + $0x78] sm:$0xff]  }
  0x56   : > { %544 = vperm.xlu1 %1987, %v478_v36  }
  0x59   : > { %420 = vxpose.xlu0.b32.end [16/16] (narrow) %v404_v35, 8 }
  0x5a   : > { %549 = vperm.xlu1 %1987, %v479_v37  }
  0x5e   : > { %634 = vperm.xlu1 %1987, %v496_v38  }
  0x62   : > { %639 = vperm.xlu1 %1987, %v497_v39  }
  0x66   : > { %554 = vperm.xlu1 %1987, %v480_v40  }
  0x6a   : > { %559 = vperm.xlu1 %1987, %v481_v41  }
  0x6e   : > { %644 = vperm.xlu1 %1987, %v498_v42  }
  0x72   : > { %649 = vperm.xlu1 %1987, %v499_v43  }
  0x76   : > { %564 = vperm.xlu1 %1987, %v482_v44  }
  0x7a   : > { %569 = vperm.xlu1 %1987, %v483_v45  }
  0x7e   : > { %659 = vperm.xlu1 %1987, %v501_v46  }
  0x82   : > { %1988 = vset.pattern.permute.xlu0 %v2099_v2  ;;  %579 = vperm.xlu1 %1987, %v485_v48   ;;  %v1033_v2 = vld [vmem:[%s2676_s4 + $0x68] sm:$0xff] }
  0x83   : > { %624 = vperm.xlu0 %1988, %v494_v47  }
  0x86   : > { %1043 = vperm.xlu1 %1987, %v1021_v50  }
  0x87   : > { %654 = vperm.xlu0 %1988, %v500_v49   ;;  %v2007_v49 = vld [vmem:[%s2675_s3 + $0x4] ss:$8 sps:$4 sm:$0xff]  }
  0x88   : > { %1228 = vmatprep.mubr.bf16.mxu1 %v2007_v49 }
  0x8a   : > { %1053 = vperm.xlu1 %1987, %v1023_v52  }
  0x8b   : > { %574 = vperm.xlu0 %1988, %v484_v51  }
  0x8e   : > { %1063 = vperm.xlu1 %1987, %v1025_v54  }
  0x8f   : > { %1038 = vperm.xlu0 %1988, %v1020_v53  }
  0x91   : > { %v2482_v34 = vpop.permute.xlu1 %584 }
  0x92   : > { %1073 = vperm.xlu1 %1987, %v1027_v56  }
  0x93   : > { %1048 = vperm.xlu0 %1988, %v1022_v55  }
  0x95   : > { %v2484_v35 = vpop.permute.xlu1 %589 }
  0x96   : > { %1083 = vperm.xlu1 %1987, %v1029_v58  }
  0x97   : > { %1058 = vperm.xlu0 %1988, %v1024_v57  }
  0x99   : > { %v505_v36 = vpop.permute.xlu1 %504 }
  0x9a   : > { %1093 = vperm.xlu1 %1987, %v1031_v60  }
  0x9b   : > { %1068 = vperm.xlu0 %1988, %v1026_v59  }
  0x9d   : > { %v421_v62 = vpop.trf.xlu0  ;;  %v510_v37 = vpop.permute.xlu1 %509 }
  0x9e   : > { %v437_v63 = vpack.c.bf16 %v421_v62, %v421_v62  ;;  %1103 = vperm.xlu1 %1987, %v1033_v2  }
  0x9f   : > { %1078 = vperm.xlu0 %1988, %v1028_v61  }
  0xa0   : > { %1944 = vmatprep.subr.msk.bf16.mxu0 %vm791_vm1, %v437_v63  ;;  %v793_v0 = vsel %vm791_vm1, %v437_v63, 0 }
  0xa1   : > { %1867 = vmatpush3.bf16.msra.mxu0 %v793_v0  ;;  %v2486_v38 = vpop.permute.xlu1 %594 }
  0xa2   : > { %1113 = vperm.xlu1 %1987, %v1035_v5  }
  0xa3   : > { %1088 = vperm.xlu0 %1988, %v1030_v3  }
  0xa4   : > { %1869 = vmatmul.mubr.msk.bf16.vlgmr.msra.gmra.mrb[0].mxu0 %vm742_vm0, %v1990_v1 }
  0xa5   : > { %1872 = vmatprep.mubr.msk.bf16.mxu0 %vm742_vm0, %v1991_v4  ;;  %v2488_v39 = vpop.permute.xlu1 %599 }
  0xa6   : > { %1340 = vperm.xlu1 %1987, %v1326_v8  }
  0xa7   : > { %1098 = vperm.xlu0 %1988, %v1032_v6  }
  0xa9   : > { %v515_v40 = vpop.permute.xlu1 %514 }
  0xaa   : > { %1350 = vperm.xlu1 %1987, %v1328_v11  }
  0xab   : > { %1108 = vperm.xlu0 %1988, %v1034_v9  }
  0xac   : > { %1873 = vmatmul.mubr.msk.bf16.gmra.mrb[4].mxu0 %vm742_vm0, %v1992_v7 }
  0xad   : > { %1876 = vmatprep.mubr.msk.bf16.mxu0 %vm742_vm0, %v1993_v10  ;;  %v520_v41 = vpop.permute.xlu1 %519 }
  0xae   : > { %1360 = vperm.xlu1 %1987, %v1330_v14  }
  0xaf   : > { %1335 = vperm.xlu0 %1988, %v1325_v12  }
  0xb1   : > { %v2490_v42 = vpop.permute.xlu1 %604 }
  0xb2   : > { %1370 = vperm.xlu1 %1987, %v1332_v17  }
  0xb3   : > { %1345 = vperm.xlu0 %1988, %v1327_v15  }
  0xb4   : > { %1877 = vmatmul.mubr.msk.bf16.gmra.mrb[8].mxu0 %vm742_vm0, %v1994_v13 }
  0xb5   : > { %1880 = vmatprep.mubr.msk.bf16.mxu0 %vm742_vm0, %v1995_v16  ;;  %v2492_v43 = vpop.permute.xlu1 %609 }
  0xb6   : > { %1489 = vperm.xlu1 %1987, %v1479_v20  }
  0xb7   : > { %1355 = vperm.xlu0 %1988, %v1329_v18  }
  0xb9   : > { %v525_v44 = vpop.permute.xlu1 %524 }
  0xba   : > { %1499 = vperm.xlu1 %1987, %v1481_v23  }
  0xbb   : > { %1365 = vperm.xlu0 %1988, %v1331_v21  }
  0xbc   : > { %1881 = vmatmul.mubr.msk.bf16.gmra.mrb[12].mxu0 %vm742_vm0, %v1996_v19 }
  0xbd   : > { %1884 = vmatprep.mubr.msk.bf16.mxu0 %vm742_vm0, %v1997_v22  ;;  %v530_v45 = vpop.permute.xlu1 %529 }
  0xbf   : > { %1484 = vperm.xlu0 %1988, %v1478_v24  }
  0xc1   : > { %v2494_v46 = vpop.permute.xlu1 %614 }
  0xc3   : > { %1494 = vperm.xlu0 %1988, %v1480_v26  }
  0xc4   : > { %1885 = vmatmul.mubr.msk.bf16.gmra.mrb[16].mxu0 %vm742_vm0, %v1998_v25 }
  0xc5   : > { %1888 = vmatprep.mubr.msk.bf16.mxu0 %vm742_vm0, %v1999_v27  ;;  %v2496_v47 = vpop.permute.xlu1 %619 }
  0xc7   : > { %1578 = vperm.xlu0 %1988, %v1575_v28  }
  0xc9   : > { %v535_v48 = vpop.permute.xlu1 %534 }
  0xcc   : > { %1889 = vmatmul.mubr.msk.bf16.gmra.mrb[20].mxu0 %vm742_vm0, %v2000_v29 }
  0xcd   : > { %1892 = vmatprep.mubr.msk.bf16.mxu0 %vm742_vm0, %v2001_v30  ;;  %v540_v50 = vpop.permute.xlu1 %539 }
  0xd1   : > { %v2501_v51 = vpop.permute.xlu1 %629 }
  0xd4   : > { %1893 = vmatmul.mubr.msk.bf16.gmra.mrb[24].mxu0 %vm742_vm0, %v2002_v31 }
  0xd5   : > { %1896 = vmatprep.mubr.msk.bf16.mxu0 %vm742_vm0, %v2003_v32  ;;  %v545_v52 = vpop.permute.xlu1 %544 }
  0xd9   : > { %v550_v53 = vpop.permute.xlu1 %549 }
  0xdc   : > { %1897 = vmatmul.mubr.msk.bf16.gmra.mrb[28].mxu0 %vm742_vm0, %v2004_v33 }
  0xdd   : > { %v2503_v54 = vpop.permute.xlu1 %634 }
  0xe1   : > { %v2505_v55 = vpop.permute.xlu1 %639 }
  0xe5   : > { %v555_v56 = vpop.permute.xlu1 %554 }
  0xe9   : > { %v560_v57 = vpop.permute.xlu1 %559 }
  0xed   : > { %v2507_v58 = vpop.permute.xlu1 %644 }
  0xf1   : > { %v2509_v62 = vpop.permute.xlu1 %649 }
  0xf5   : > { %v565_v9 = vpop.permute.xlu1 %564 }
  0xf9   : > { %v570_v22 = vpop.permute.xlu1 %569 }
 0x102   : > { %v2515_v18 = vpop.permute.xlu0 %624 }
 0x106   : > { %v2521_v30 = vpop.permute.xlu0 %654 }
 0x177   : > { %v1870_v59 = vpop.f32.mrb[0].mxu0 }
 0x178   : > { %v838_v60 = vadd.f32 %v1870_v59, %v515_v40  ;;  %v829_v61 = vpop.f32.mrb[1].mxu0 }
 0x179   : > { %v830_v63 = vadd.f32 %v829_v61, %v505_v36  ;;  %v1871_v0 = vpop.f32.mrb[2].mxu0 }
 0x17a   : > { %v841_v1 = vadd.f32 %v1871_v0, %v520_v41  ;;  %v832_v2 = vpop.f32.mrb[3].mxu0  ;;  %v958_v4 = vmax.f32 %v838_v60, 0.0 }
 0x17b   : > { %v833_v3 = vadd.f32 %v832_v2, %v510_v37  ;;  %v956_v6 = vmax.f32 %v830_v63, 0.0  ;;  %v2523_v37 = vpop.permute.xlu1 %659 }
 0x17c   : > { %v959_v5 = vmax.f32 %v841_v1, 0.0 }
 0x17d   : > { %v957_v7 = vmax.f32 %v833_v3, 0.0 }
 0x17e   : > { %v2511_v8 = vpack.c.bf16 %v959_v5, %v958_v4 }
 0x17f   : > { %v1874_v10 = vpop.f32.mrb[4].mxu0  ;;  %v2513_v11 = vpack.c.bf16 %v957_v7, %v956_v6  ;;  %v580_v63 = vpop.permute.xlu1 %579 }
 0x180   : > { %v854_v12 = vadd.f32 %v1874_v10, %v535_v48  ;;  %v845_v13 = vpop.f32.mrb[5].mxu0 }
 0x181   : > { %v846_v14 = vadd.f32 %v845_v13, %v525_v44  ;;  %v1875_v15 = vpop.f32.mrb[6].mxu0 }
 0x182   : > { %v857_v16 = vadd.f32 %v1875_v15, %v540_v50  ;;  %v848_v17 = vpop.f32.mrb[7].mxu0  ;;  %v962_v20 = vmax.f32 %v854_v12, 0.0  ;;  %v575_v50 = vpop.permute.xlu0 %574 }
 0x183   : > { %v849_v19 = vadd.f32 %v848_v17, %v530_v45  ;;  %v960_v23 = vmax.f32 %v846_v14, 0.0 }
 0x184   : > { %v963_v21 = vmax.f32 %v857_v16, 0.0 }
 0x185   : > { %v961_v24 = vmax.f32 %v849_v19, 0.0 }
 0x186   : > { %v2517_v25 = vpack.c.bf16 %v963_v21, %v962_v20 }
 0x187   : > { %v2519_v26 = vpack.c.bf16 %v961_v24, %v960_v23  ;;  %v1878_v27 = vpop.f32.mrb[8].mxu0 }
 0x188   : > { %v870_v28 = vadd.f32 %v1878_v27, %v555_v56  ;;  %v861_v29 = vpop.f32.mrb[9].mxu0 }
 0x189   : > { %v862_v31 = vadd.f32 %v861_v29, %v545_v52  ;;  %v1879_v32 = vpop.f32.mrb[10].mxu0 }
 0x18a   : > { %v873_v33 = vadd.f32 %v1879_v32, %v560_v57  ;;  %v864_v36 = vpop.f32.mrb[11].mxu0  ;;  %v966_v41 = vmax.f32 %v870_v28, 0.0 }
 0x18b   : > { %v865_v40 = vadd.f32 %v864_v36, %v550_v53  ;;  %v964_v45 = vmax.f32 %v862_v31, 0.0 }
 0x18c   : > { %v967_v44 = vmax.f32 %v873_v33, 0.0 }
 0x18d   : > { %v965_v48 = vmax.f32 %v865_v40, 0.0 }
 0x18e   : > { %v2525_v49 = vpack.c.bf16 %v967_v44, %v966_v41 }
 0x18f   : > { %v2527_v59 = vpack.c.bf16 %v965_v48, %v964_v45  ;;  %v1882_v56 = vpop.f32.mrb[12].mxu0 }
 0x190   : > { %v886_v60 = vadd.f32 %v1882_v56, %v575_v50  ;;  %v877_v61 = vpop.f32.mrb[13].mxu0 }
 0x191   : > { %v878_v52 = vadd.f32 %v877_v61, %v565_v9  ;;  %v1883_v0 = vpop.f32.mrb[14].mxu0 }
 0x192   : > { %v889_v57 = vadd.f32 %v1883_v0, %v580_v63  ;;  %v880_v1 = vpop.f32.mrb[15].mxu0  ;;  %v970_v3 = vmax.f32 %v886_v60, 0.0 }
 0x193   : > { %v881_v2 = vadd.f32 %v880_v1, %v570_v22  ;;  %v968_v4 = vmax.f32 %v878_v52, 0.0 }
 0x194   : > { %v971_v53 = vmax.f32 %v889_v57, 0.0 }
 0x195   : > { %v969_v5 = vmax.f32 %v881_v2, 0.0 }
 0x196   : > { %v2529_v6 = vpack.c.bf16 %v971_v53, %v970_v3 }
 0x197   : > { %v2531_v7 = vpack.c.bf16 %v969_v5, %v968_v4  ;;  %v1886_v10 = vpop.f32.mrb[16].mxu0  ;;  %v2014_v5 = vld [vmem:[%s2675_s3 + $0x34] ss:$8 sps:$4 sm:$0xff]  }
 0x198   : > { %v902_v12 = vadd.f32 %v1886_v10, %v2486_v38  ;;  %v893_v13 = vpop.f32.mrb[17].mxu0  ;;  %v2019_v10 = vld [vmem:[%s2675_s3 + $0x40] ss:$8 sps:$4 sm:$0xff]  }
 0x199   : > { %v894_v14 = vadd.f32 %v893_v13, %v2482_v34  ;;  %v1887_v15 = vpop.f32.mrb[18].mxu0  ;;  %v2022_v13 = vld [vmem:[%s2675_s3 + $0x50] ss:$8 sps:$4 sm:$0xff]  }
 0x19a   : > { %v905_v9 = vadd.f32 %v1887_v15, %v2488_v39  ;;  %v896_v16 = vpop.f32.mrb[19].mxu0  ;;  %v974_v19 = vmax.f32 %v902_v12, 0.0  ;;  %v2020_v12 = vld [vmem:[%s2675_s3 + $0x54] ss:$8 sps:$4 sm:$0xff]   ;;  %v2025_v15 = vld [vmem:[%s2675_s3 + $0x60] ss:$8 sps:$4 sm:$0xff]  }
 0x19b   : > { %v897_v17 = vadd.f32 %v896_v16, %v2484_v35  ;;  %v972_v21 = vmax.f32 %v894_v14, 0.0  ;;  %v2023_v14 = vld [vmem:[%s2675_s3 + $0x64] ss:$8 sps:$4 sm:$0xff]   ;;  %v2028_v16 = vld [vmem:[%s2675_s3 + $0x70] ss:$8 sps:$4 sm:$0xff]  }
 0x19c   : > { %v975_v20 = vmax.f32 %v905_v9, 0.0  ;;  %v2026_v9 = vld [vmem:[%s2675_s3 + $0x74] ss:$8 sps:$4 sm:$0xff]  }
 0x19d   : > { %v973_v22 = vmax.f32 %v897_v17, 0.0  ;;  %v2029_v17 = vld [vmem:[%s2677_s5] sm:$0xff]  }
 0x19e   : > { %v1013_v23 = vpack.c.bf16 %v975_v20, %v974_v19  ;;  %1916 = vmatprep.mubr.bf16.mxu0 %v2029_v17 }
 0x19f   : > { %v1890_v24 = vpop.f32.mrb[20].mxu0  ;;  %v1012_v27 = vpack.c.bf16 %v973_v22, %v972_v21 }
 0x1a0   : > { %v918_v28 = vadd.f32 %v1890_v24, %v2494_v46  ;;  %v909_v29 = vpop.f32.mrb[21].mxu0 }
 0x1a1   : > { %v910_v38 = vadd.f32 %v909_v29, %v2490_v42  ;;  %v1891_v31 = vpop.f32.mrb[22].mxu0  ;;  %1781 = vmatprep.subr.bf16.mxu1 %v1012_v27  ;;  %v1044_v29 = vpop.permute.xlu1 %1043 }
 0x1a2   : > { %v921_v34 = vadd.f32 %v1891_v31, %v2496_v47  ;;  %v912_v39 = vpop.f32.mrb[23].mxu0  ;;  %1782 = vmatpush3.bf16.msra.mxu1 %v2513_v11  ;;  %v978_v32 = vmax.f32 %v918_v28, 0.0 }
 0x1a3   : > { %v913_v35 = vadd.f32 %v912_v39, %v2492_v43  ;;  %1783 = vmatprep.subr.bf16.mxu1 %v1013_v23  ;;  %v976_v36 = vmax.f32 %v910_v38, 0.0  ;;  %v1039_v23 = vpop.permute.xlu0 %1038 }
 0x1a4   : > { %v979_v33 = vmax.f32 %v921_v34, 0.0 }
 0x1a5   : > { %v977_v40 = vmax.f32 %v913_v35, 0.0 }
 0x1a6   : > { %v1015_v41 = vpack.c.bf16 %v979_v33, %v978_v32  ;;  %1784 = vmatpush3.bf16.msra.mxu1 %v2511_v8 }
 0x1a7   : > { %v1014_v46 = vpack.c.bf16 %v977_v40, %v976_v36  ;;  %v1894_v44 = vpop.f32.mrb[24].mxu0  ;;  %v1049_v40 = vpop.permute.xlu0 %1048 }
 0x1a8   : > { %v934_v42 = vadd.f32 %v1894_v44, %v2503_v54  ;;  %v925_v45 = vpop.f32.mrb[25].mxu0 }
 0x1a9   : > { %v926_v47 = vadd.f32 %v925_v45, %v2515_v18  ;;  %v1895_v48 = vpop.f32.mrb[26].mxu0  ;;  %1785 = vmatprep.subr.bf16.mxu1 %v1014_v46 }
 0x1aa   : > { %v937_v11 = vadd.f32 %v1895_v48, %v2505_v55  ;;  %v928_v43 = vpop.f32.mrb[27].mxu0  ;;  %1786 = vmatpush3.bf16.msra.mxu1 %v2519_v26  ;;  %v982_v56 = vmax.f32 %v934_v42, 0.0  ;;  %v1054_v42 = vpop.permute.xlu1 %1053 }
 0x1ab   : > { %v929_v50 = vadd.f32 %v928_v43, %v2501_v51  ;;  %1787 = vmatprep.subr.bf16.mxu1 %v1015_v41  ;;  %v980_v8 = vmax.f32 %v926_v47, 0.0 }
 0x1ac   : > { %v983_v60 = vmax.f32 %v937_v11, 0.0 }
 0x1ad   : > { %v981_v61 = vmax.f32 %v929_v50, 0.0 }
 0x1ae   : > { %v1017_v63 = vpack.c.bf16 %v983_v60, %v982_v56  ;;  %1788 = vmatpush3.bf16.msra.mxu1 %v2517_v25 }
 0x1af   : > { %v1016_v54 = vpack.c.bf16 %v981_v61, %v980_v8  ;;  %v1898_v52 = vpop.f32.mrb[28].mxu0  ;;  %v1059_v8 = vpop.permute.xlu0 %1058 }
 0x1b0   : > { %v950_v18 = vadd.f32 %v1898_v52, %v2521_v30  ;;  %v941_v0 = vpop.f32.mrb[29].mxu0  ;;  %v1064_v52 = vpop.permute.xlu1 %1063 }
 0x1b1   : > { %v942_v55 = vadd.f32 %v941_v0, %v2507_v58  ;;  %v1899_v57 = vpop.f32.mrb[30].mxu0  ;;  %1789 = vmatprep.subr.bf16.mxu1 %v1016_v54  ;;  %v2005_v58 = vld [vmem:[%s2675_s3] ss:$8 sps:$4 sm:$0xff]  }
 0x1b2   : > { %v953_v26 = vadd.f32 %v1899_v57, %v2523_v37  ;;  %v944_v51 = vpop.f32.mrb[31].mxu0  ;;  %1790 = vmatpush3.bf16.msra.mxu1 %v2527_v59  ;;  %v986_v2 = vmax.f32 %v950_v18, 0.0  ;;  %v2010_v37 = vld [vmem:[%s2675_s3 + $0x10] ss:$8 sps:$4 sm:$0xff]   ;;  %v2013_v59 = vld [vmem:[%s2675_s3 + $0x20] ss:$8 sps:$4 sm:$0xff]  }
 0x1b3   : > { %v945_v1 = vadd.f32 %v944_v51, %v2509_v62  ;;  %1791 = vmatprep.subr.bf16.mxu1 %v1017_v63  ;;  %v984_v25 = vmax.f32 %v942_v55, 0.0  ;;  %v2008_v62 = vld [vmem:[%s2675_s3 + $0x14] ss:$8 sps:$4 sm:$0xff]  }
 0x1b4   : > { %v987_v3 = vmax.f32 %v953_v26, 0.0 }
 0x1b5   : > { %v985_v53 = vmax.f32 %v945_v1, 0.0 }
 0x1b6   : > { %v1019_v4 = vpack.c.bf16 %v987_v3, %v986_v2  ;;  %1792 = vmatpush3.bf16.msra.mxu1 %v2525_v49  ;;  %v2011_v49 = vld [vmem:[%s2675_s3 + $0x24] ss:$8 sps:$4 sm:$0xff]   ;;  %v1069_v3 = vpop.permute.xlu0 %1068 }
 0x1b7   : > { %v1018_v30 = vpack.c.bf16 %v985_v53, %v984_v25 }
 0x1b9   : > { %1793 = vmatprep.subr.bf16.mxu1 %v1018_v30  ;;  %v1074_v30 = vpop.permute.xlu1 %1073 }
 0x1ba   : > { %1794 = vmatpush3.bf16.msra.mxu1 %v2531_v7  ;;  %v2017_v7 = vld [vmem:[%s2675_s3 + $0x44] ss:$8 sps:$4 sm:$0xff]  }
 0x1bb   : > { %1795 = vmatprep.subr.bf16.mxu1 %v1019_v4 }
 0x1be   : > { %1796 = vmatpush3.bf16.msra.mxu1 %v2529_v6  ;;  %v2016_v6 = vld [vmem:[%s2675_s3 + $0x30] ss:$8 sps:$4 sm:$0xff]  }
 0x1c1   : > { %1229 = vmatmul.mubr.bf16.vlgmr.msra.gmra.mrb[0].mxu1 %v2005_v58 }
 0x1c2   : > { %1236 = vmatprep.mubr.bf16.mxu1 %v2008_v62 }
 0x1c9   : > { %1237 = vmatmul.mubr.bf16.gmra.mrb[4].mxu1 %v2010_v37 }
 0x1ca   : > { %1244 = vmatprep.mubr.bf16.mxu1 %v2011_v49 }
 0x1d1   : > { %1245 = vmatmul.mubr.bf16.gmra.mrb[8].mxu1 %v2013_v59 }
 0x1d2   : > { %1252 = vmatprep.mubr.bf16.mxu1 %v2014_v5 }
 0x1d9   : > { %1253 = vmatmul.mubr.bf16.gmra.mrb[12].mxu1 %v2016_v6 }
 0x1da   : > { %1260 = vmatprep.mubr.bf16.mxu1 %v2017_v7 }
 0x1e1   : > { %1261 = vmatmul.mubr.bf16.gmra.mrb[16].mxu1 %v2019_v10  ;;  %v1079_v10 = vpop.permute.xlu0 %1078 }
 0x1e2   : > { %1268 = vmatprep.mubr.bf16.mxu1 %v2020_v12 }
 0x1e9   : > { %1269 = vmatmul.mubr.bf16.gmra.mrb[20].mxu1 %v2022_v13 }
 0x1ea   : > { %1276 = vmatprep.mubr.bf16.mxu1 %v2023_v14 }
 0x1f1   : > { %1277 = vmatmul.mubr.bf16.gmra.mrb[24].mxu1 %v2025_v15  ;;  %v1084_v15 = vpop.permute.xlu1 %1083 }
 0x1f2   : > { %1284 = vmatprep.mubr.bf16.mxu1 %v2026_v9 }
 0x1f9   : > { %1285 = vmatmul.mubr.bf16.gmra.mrb[28].mxu1 %v2028_v16 }
 0x294   : > { %v1797_v19 = vpop.f32.mrb[0].mxu1 }
 0x295   : > { %v1798_v20 = vpop.f32.mrb[1].mxu1 }
 0x296   : > { %v1799_v21 = vadd.f32 %v1798_v20, %v1797_v19  ;;  %v1800_v22 = vpop.f32.mrb[2].mxu1 }
 0x297   : > { %v1801_v24 = vpop.f32.mrb[3].mxu1 }
 0x298   : > { %v1231_v27 = vadd.f32 %v1799_v21, %v1039_v23  ;;  %v1802_v28 = vadd.f32 %v1801_v24, %v1800_v22  ;;  %v1089_v24 = vpop.permute.xlu0 %1088 }
 0x29a   : > { %v1234_v38 = vadd.f32 %v1802_v28, %v1044_v29  ;;  %v1293_v31 = vmax.f32 %v1231_v27, 0.0 }
 0x29c   : > { %v1294_v34 = vmax.f32 %v1234_v38, 0.0  ;;  %v1803_v39 = vpop.f32.mrb[4].mxu1  ;;  %v1094_v38 = vpop.permute.xlu1 %1093 }
 0x29d   : > { %v1804_v35 = vpop.f32.mrb[5].mxu1 }
 0x29e   : > { %v1805_v32 = vadd.f32 %v1804_v35, %v1803_v39  ;;  %v1806_v33 = vpop.f32.mrb[6].mxu1  ;;  %v1317_v36 = vpack.c.bf16 %v1294_v34, %v1293_v31 }
 0x29f   : > { %v1807_v41 = vpop.f32.mrb[7].mxu1 }
 0x2a0   : > { %v1239_v46 = vadd.f32 %v1805_v32, %v1049_v40  ;;  %v1808_v44 = vadd.f32 %v1807_v41, %v1806_v33  ;;  %1900 = vmatprep.subr.bf16.mxu0 %v1317_v36  ;;  %v1099_v41 = vpop.permute.xlu0 %1098 }
 0x2a1   : > { %1901 = vmatpush3.bf16.msra.mxu0 %v1317_v36 }
 0x2a2   : > { %v1242_v45 = vadd.f32 %v1808_v44, %v1054_v42  ;;  %v1295_v47 = vmax.f32 %v1239_v46, 0.0 }
 0x2a4   : > { %v1296_v48 = vmax.f32 %v1242_v45, 0.0  ;;  %v1809_v11 = vpop.f32.mrb[8].mxu1  ;;  %v1104_v45 = vpop.permute.xlu1 %1103 }
 0x2a5   : > { %v1810_v43 = vpop.f32.mrb[9].mxu1 }
 0x2a6   : > { %v1811_v50 = vadd.f32 %v1810_v43, %v1809_v11  ;;  %v1812_v56 = vpop.f32.mrb[10].mxu1  ;;  %v1318_v60 = vpack.c.bf16 %v1296_v48, %v1295_v47 }
 0x2a7   : > { %v1813_v61 = vpop.f32.mrb[11].mxu1 }
 0x2a8   : > { %v1247_v63 = vadd.f32 %v1811_v50, %v1059_v8  ;;  %v1814_v54 = vadd.f32 %v1813_v61, %v1812_v56  ;;  %1902 = vmatprep.subr.bf16.mxu0 %v1318_v60  ;;  %v1109_v61 = vpop.permute.xlu0 %1108 }
 0x2a9   : > { %1903 = vmatpush3.bf16.msra.mxu0 %v1318_v60 }
 0x2aa   : > { %v1250_v18 = vadd.f32 %v1814_v54, %v1064_v52  ;;  %v1297_v0 = vmax.f32 %v1247_v63, 0.0 }
 0x2ac   : > { %v1298_v55 = vmax.f32 %v1250_v18, 0.0  ;;  %v1815_v57 = vpop.f32.mrb[12].mxu1  ;;  %v1114_v18 = vpop.permute.xlu1 %1113 }
 0x2ad   : > { %v1816_v26 = vpop.f32.mrb[13].mxu1 }
 0x2ae   : > { %v1817_v51 = vadd.f32 %v1816_v26, %v1815_v57  ;;  %v1818_v1 = vpop.f32.mrb[14].mxu1  ;;  %v1319_v2 = vpack.c.bf16 %v1298_v55, %v1297_v0 }
 0x2af   : > { %v1819_v25 = vpop.f32.mrb[15].mxu1 }
 0x2b0   : > { %v1255_v53 = vadd.f32 %v1817_v51, %v1069_v3  ;;  %v1820_v4 = vadd.f32 %v1819_v25, %v1818_v1  ;;  %1904 = vmatprep.subr.bf16.mxu0 %v1319_v2  ;;  %v2030_v51 = vld [vmem:[%s2677_s5 + $0x8] sm:$0xff]   ;;  %v2031_v1 = vld [vmem:[%s2677_s5 + $0x10] sm:$0xff]   ;;  %v2033_v3 = vld [vmem:[%s2679_s7] sm:$0xff]   ;;  %v1336_v25 = vpop.permute.xlu0 %1335 }
 0x2b1   : > { %1905 = vmatpush3.bf16.msra.mxu0 %v1319_v2  ;;  %v2032_v2 = vld [vmem:[%s2677_s5 + $0x18] sm:$0xff]  }
 0x2b2   : > { %v1258_v58 = vadd.f32 %v1820_v4, %v1074_v30  ;;  %v1299_v62 = vmax.f32 %v1255_v53, 0.0  ;;  %v1341_v53 = vpop.permute.xlu1 %1340 }
 0x2b4   : > { %v1300_v37 = vmax.f32 %v1258_v58, 0.0  ;;  %v1821_v49 = vpop.f32.mrb[16].mxu1  ;;  %v1346_v4 = vpop.permute.xlu0 %1345 }
 0x2b5   : > { %v1822_v59 = vpop.f32.mrb[17].mxu1 }
 0x2b6   : > { %v1823_v5 = vadd.f32 %v1822_v59, %v1821_v49  ;;  %v1824_v6 = vpop.f32.mrb[18].mxu1  ;;  %v1320_v7 = vpack.c.bf16 %v1300_v37, %v1299_v62  ;;  %v1351_v30 = vpop.permute.xlu1 %1350 }
 0x2b7   : > { %v1825_v12 = vpop.f32.mrb[19].mxu1 }
 0x2b8   : > { %v1263_v13 = vadd.f32 %v1823_v5, %v1079_v10  ;;  %v1826_v14 = vadd.f32 %v1825_v12, %v1824_v6  ;;  %1906 = vmatprep.subr.bf16.mxu0 %v1320_v7  ;;  %v1356_v49 = vpop.permute.xlu0 %1355 }
 0x2b9   : > { %1907 = vmatpush3.bf16.msra.mxu0 %v1320_v7 }
 0x2ba   : > { %v1266_v9 = vadd.f32 %v1826_v14, %v1084_v15  ;;  %v1301_v16 = vmax.f32 %v1263_v13, 0.0  ;;  %v1361_v10 = vpop.permute.xlu1 %1360 }
 0x2bc   : > { %v1302_v17 = vmax.f32 %v1266_v9, 0.0  ;;  %v1827_v19 = vpop.f32.mrb[20].mxu1 }
 0x2bd   : > { %v1828_v20 = vpop.f32.mrb[21].mxu1 }
 0x2be   : > { %v1829_v21 = vadd.f32 %v1828_v20, %v1827_v19  ;;  %v1830_v22 = vpop.f32.mrb[22].mxu1  ;;  %v1321_v23 = vpack.c.bf16 %v1302_v17, %v1301_v16  ;;  %v1366_v17 = vpop.permute.xlu0 %1365 }
 0x2bf   : > { %v1831_v27 = vpop.f32.mrb[23].mxu1 }
 0x2c0   : > { %v1271_v28 = vadd.f32 %v1829_v21, %v1089_v24  ;;  %v1832_v29 = vadd.f32 %v1831_v27, %v1830_v22  ;;  %1908 = vmatprep.subr.bf16.mxu0 %v1321_v23 }
 0x2c1   : > { %1909 = vmatpush3.bf16.msra.mxu0 %v1321_v23  ;;  %v1371_v23 = vpop.permute.xlu1 %1370 }
 0x2c2   : > { %v1274_v31 = vadd.f32 %v1832_v29, %v1094_v38  ;;  %v1303_v34 = vmax.f32 %v1271_v28, 0.0 }
 0x2c4   : > { %v1304_v39 = vmax.f32 %v1274_v31, 0.0  ;;  %v1833_v35 = vpop.f32.mrb[24].mxu1 }
 0x2c5   : > { %v1834_v32 = vpop.f32.mrb[25].mxu1 }
 0x2c6   : > { %v1835_v33 = vadd.f32 %v1834_v32, %v1833_v35  ;;  %v1836_v36 = vpop.f32.mrb[26].mxu1  ;;  %v1322_v40 = vpack.c.bf16 %v1304_v39, %v1303_v34 }
 0x2c7   : > { %v1837_v46 = vpop.f32.mrb[27].mxu1 }
 0x2c8   : > { %v1279_v44 = vadd.f32 %v1835_v33, %v1099_v41  ;;  %v1838_v42 = vadd.f32 %v1837_v46, %v1836_v36  ;;  %1910 = vmatprep.subr.bf16.mxu0 %v1322_v40  ;;  %v2034_v36 = vld [vmem:[%s2679_s7 + $0x8] sm:$0xff]   ;;  %v1485_v41 = vpop.permute.xlu0 %1484  ;;  %v1490_v46 = vpop.permute.xlu1 %1489 }
 0x2c9   : > { %1911 = vmatpush3.bf16.msra.mxu0 %v1322_v40  ;;  %v2100_v40 = vmov 0.0  }
 0x2ca   : > { %v1282_v47 = vadd.f32 %v1838_v42, %v1104_v45  ;;  %v1305_v48 = vmax.f32 %v1279_v44, 0.0 }
 0x2cc   : > { %v1306_v11 = vmax.f32 %v1282_v47, 0.0  ;;  %v1839_v43 = vpop.f32.mrb[28].mxu1  ;;  %v1495_v44 = vpop.permute.xlu0 %1494 }
 0x2cd   : > { %v1840_v50 = vpop.f32.mrb[29].mxu1 }
 0x2ce   : > { %v1841_v56 = vadd.f32 %v1840_v50, %v1839_v43  ;;  %v1842_v60 = vpop.f32.mrb[30].mxu1  ;;  %v1323_v8 = vpack.c.bf16 %v1306_v11, %v1305_v48  ;;  %v1500_v48 = vpop.permute.xlu1 %1499 }
 0x2cf   : > { %v1843_v63 = vpop.f32.mrb[31].mxu1 }
 0x2d0   : > { %v1287_v54 = vadd.f32 %v1841_v56, %v1109_v61  ;;  %v1844_v52 = vadd.f32 %v1843_v63, %v1842_v60  ;;  %1912 = vmatprep.subr.bf16.mxu0 %v1323_v8 }
 0x2d1   : > { %1913 = vmatpush3.bf16.msra.mxu0 %v1323_v8 }
 0x2d2   : > { %v1290_v0 = vadd.f32 %v1844_v52, %v1114_v18  ;;  %v1307_v55 = vmax.f32 %v1287_v54, 0.0 }
 0x2d4   : > { %v1308_v57 = vmax.f32 %v1290_v0, 0.0  ;;  %v1572_v0 = vld [vmem:[%s2681_s9] sm:$0x1] }
 0x2d6   : > { %v1324_v26 = vpack.c.bf16 %v1308_v57, %v1307_v55  ;;  %v1581_v55 = vlaneseq }
 0x2d8   : > { %1914 = vmatprep.subr.bf16.mxu0 %v1324_v26  ;;  %v1582_v57 = vshrl.u32 %v1581_v55, 7 }
 0x2d9   : > { %1915 = vmatpush3.bf16.msra.mxu0 %v1324_v26 }
 0x2da   : > { %v1583_v26 = vsub.s32 0, %v1582_v57 }
 0x2dc   : > { %1917 = vmatmul.mubr.bf16.vlgmr.msra.gmra.mrb[32].mxu0 %v2030_v51  ;;  %v1579_v51 = vpop.permute.xlu0 %1578 }
 0x2dd   : > { %1920 = vmatprep.mubr.bf16.mxu0 %v2031_v1  ;;  %v1584_v1 = vrot.slane %v1579_v51, %v1583_v26 }
 0x2e4   : > { %1921 = vmatmul.mubr.bf16.gmra.mrb[36].mxu0 %v2032_v2 }
 0x2e5   : > { %1932 = vmatprep.mubr.msk.bf16.mxu0 %vm1512_vm2, %v2033_v3 }
 0x3af   : > { %v1918_v58 = vpop.f32.mrb[32].mxu0 }
 0x3b0   : > { %v1440_v62 = vadd.f32 %v1918_v58, %v1346_v4  ;;  %v1431_v37 = vpop.f32.mrb[33].mxu0 }
 0x3b1   : > { %v1432_v59 = vadd.f32 %v1431_v37, %v1336_v25  ;;  %v1919_v5 = vpop.f32.mrb[34].mxu0 }
 0x3b2   : > { %v1443_v6 = vadd.f32 %v1919_v5, %v1351_v30  ;;  %v1434_v7 = vpop.f32.mrb[35].mxu0  ;;  %v1464_v13 = vmax.f32 %v1440_v62, 0.0 }
 0x3b3   : > { %v1435_v12 = vadd.f32 %v1434_v7, %v1341_v53  ;;  %v1462_v15 = vmax.f32 %v1432_v59, 0.0 }
 0x3b4   : > { %v1465_v14 = vmax.f32 %v1443_v6, 0.0 }
 0x3b5   : > { %v1463_v9 = vmax.f32 %v1435_v12, 0.0 }
 0x3b6   : > { %v1475_v16 = vpack.c.bf16 %v1465_v14, %v1464_v13 }
 0x3b7   : > { %v1474_v19 = vpack.c.bf16 %v1463_v9, %v1462_v15  ;;  %v1922_v20 = vpop.f32.mrb[36].mxu0 }
 0x3b8   : > { %v1456_v21 = vadd.f32 %v1922_v20, %v1366_v17  ;;  %v1447_v22 = vpop.f32.mrb[37].mxu0 }
 0x3b9   : > { %v1448_v24 = vadd.f32 %v1447_v22, %v1356_v49  ;;  %v1923_v27 = vpop.f32.mrb[38].mxu0  ;;  %1924 = vmatprep.subr.bf16.mxu0 %v1474_v19 }
 0x3ba   : > { %v1459_v28 = vadd.f32 %v1923_v27, %v1371_v23  ;;  %v1450_v29 = vpop.f32.mrb[39].mxu0  ;;  %1925 = vmatpush3.bf16.msra.mxu0 %v1474_v19  ;;  %v1468_v31 = vmax.f32 %v1456_v21, 0.0 }
 0x3bb   : > { %v1451_v38 = vadd.f32 %v1450_v29, %v1361_v10  ;;  %1926 = vmatprep.subr.bf16.mxu0 %v1475_v16  ;;  %v1466_v39 = vmax.f32 %v1448_v24, 0.0 }
 0x3bc   : > { %v1469_v34 = vmax.f32 %v1459_v28, 0.0 }
 0x3bd   : > { %v1467_v35 = vmax.f32 %v1451_v38, 0.0 }
 0x3be   : > { %v1477_v32 = vpack.c.bf16 %v1469_v34, %v1468_v31  ;;  %1927 = vmatpush3.bf16.msra.mxu0 %v1475_v16 }
 0x3bf   : > { %v1476_v33 = vpack.c.bf16 %v1467_v35, %v1466_v39 }
 0x3c1   : > { %1928 = vmatprep.subr.bf16.mxu0 %v1476_v33 }
 0x3c2   : > { %1929 = vmatpush3.bf16.msra.mxu0 %v1476_v33 }
 0x3c3   : > { %1930 = vmatprep.subr.bf16.mxu0 %v1477_v32 }
 0x3c6   : > { %1931 = vmatpush3.bf16.msra.mxu0 %v1477_v32 }
 0x3c7   : > { %1936 = vmatprep.subr.bf16.mxu0 %v2100_v40 }
 0x3c9   : > { %1933 = vmatmul.mubr.msk.bf16.vlgmr.msra.gmra.mrb[40].mxu0 %vm1512_vm2, %v2034_v36 }
 0x3ca   : > { %1940 = vmatprep.mubr.msk.bf16.mxu0 %vm2101_vm3, %v2100_v40 }
 0x49c   : > { %v1934_v42 = vpop.f32.mrb[40].mxu0 }
 0x49d   : > { %v1562_v45 = vadd.f32 %v1934_v42, %v1495_v44  ;;  %v1553_v47 = vpop.f32.mrb[41].mxu0 }
 0x49e   : > { %v1554_v11 = vadd.f32 %v1553_v47, %v1485_v41  ;;  %v1935_v43 = vpop.f32.mrb[42].mxu0 }
 0x49f   : > { %v1565_v50 = vadd.f32 %v1935_v43, %v1500_v48  ;;  %v1556_v56 = vpop.f32.mrb[43].mxu0  ;;  %v1570_v8 = vmax.f32 %v1562_v45, 0.0 }
 0x4a0   : > { %v1557_v60 = vadd.f32 %v1556_v56, %v1490_v46  ;;  %v1568_v63 = vmax.f32 %v1554_v11, 0.0 }
 0x4a1   : > { %v1571_v61 = vmax.f32 %v1565_v50, 0.0 }
 0x4a2   : > { %v1569_v54 = vmax.f32 %v1557_v60, 0.0 }
 0x4a3   : > { %v1574_v52 = vpack.c.bf16 %v1571_v61, %v1570_v8 }
 0x4a4   : > { %v1573_v18 = vpack.c.bf16 %v1569_v54, %v1568_v63 }
 0x4a6   : > { %1937 = vmatpush3.bf16.msra.mxu0 %v1573_v18 }
 0x4a7   : > { %1938 = vmatprep.subr.bf16.mxu0 %v2100_v40 }
 0x4aa   : > { %1939 = vmatpush3.bf16.msra.mxu0 %v1574_v52 }
 0x4ad   : > { %1941 = vmatmul.mubr.msk.bf16.vlgmr.msra.gmra.mrb[44].mxu0 %vm1585_vm4, %v1572_v0 }
 0x580   : > { %v1623_v2 = vpop.f32.mrb[44].mxu0 }
 0x581   : > { %v1624_v3 = vadd.f32 %v1623_v2, %v1584_v1  ;;  %v1942_v25 = vpop.f32.mrb[45].mxu0 }
 0x582   : > { %v1626_v53 = vpop.f32.mrb[46].mxu0 }
 0x583   : > { %1629 = vst [vmem:[%s381_s25] sm:$0x1] %v1624_v3  ;;  %v1943_v4 = vpop.f32.mrb[47].mxu0 }
 0x584   : > { %2048 = shalt.err (!%p2045_p3)
}
 0x585   : > { %s2049_s30 = scalar_lea.hbm %s2630_s14, 16  ;;  %s2053_s12 = scalar_lea.hbm %s2683_s11, 32 }
 0x586   : > { %p2050_p4 = scmp.ne.s32.totalorder %s2630_s14, %s2049_s30  ;;  %p2054_p9 = scmp.lt.u32.totalorder %s2630_s14, %s2683_s11 }
 0x587   : > { %p2055_p10 = scmp.lt.u32.totalorder %s2053_s12, %s2049_s30  ;;  %p2057_p12 = scmp.lt.u32.totalorder %s2049_s30, %s2630_s14 }
 0x588   : > { %p2051_p7 = pnand %p2050_p4, %p2201_p5 }
 0x589   : > { %p2056_p11 = por %p2055_p10, %p2054_p9 }
 0x58a   : > { %p2052_p8 = pneg %p2051_p7 }
 0x58b   : > { %p2058_p13 = por %p2057_p12, %p2056_p11 }
 0x58d   : > { %p2059_p0 = pnand %p2058_p13, %p2052_p8 }
 0x58f   : > { %2062 = shalt.err (!%p2059_p0)
}
 0x590   : > { %1945 = dma.vmem_to_hbm [thread:$0]  (%p2201_p5), %s2632_s26, 16, %s2630_s14, %s1631_s15  }
 0x591 PF: > { %p1951_p1 = scmp.ge.s32.totalorder %s2097_s22, 2  ;;  %s1655_s16 = sand.u32 1, %s2085_s19  }
 0x592   : > { %s1656_s18 = scalar_lea.sflag [#allocation4], %s1655_s16 }
 0x593   : > { %p1948_p2 = pnand %p1951_p1, %p2205_p6 }
 0x595   : > { %2080 = dma.done.wait (!%p1948_p2), %s1656_s18, 16  }
 0x596   : > { %2082 = vsyncadd (!%p1948_p2), %s1656_s18, 4294967280  ;;  %p23_p3 = scmp.ge.s32.totalorder %s2189_s24, 4   ;;  %s2686_s19 = smov %s2089_s20 }
 0x597   : > { %s2687_s20 = smov %s2093_s21  ;;  %s2688_s21 = smov %s2199_s27 }
 0x598   : > { %s2689_s22 = smov %s2189_s24  ;;  %25 = sbr.rel (!%p23_p3) target bundleno = 6 (0x6), region = 99 }
 0x59f   :  { %1660 = vsyncpa [#allocation4], 1 }
 0x5a0   :  { %1662 = vsyncpa [#allocation4 + $0x1], 1 }

</bundles_post_ra>
